<compile_context>
chip_gen: v5e
topology: v5e:2x2
jax: 0.10.0
libtpu: 0.0.40
codegen_flags: <defaults>
</compile_context>

<pallas_src>
import jax
import jax.numpy as jnp
from jax.experimental import pallas as pl
from jax.experimental.pallas import tpu as pltpu

SUBLANE = 8          # TPU sublane width (second-to-last dim granularity)
H1, H2 = 64, 32      # hidden dims of the module


def _round_up(n, m):
    return (n + m - 1) // m * m


# ----------------------------------------------------------------------------
# Kernel: one fused pass  x @ W1 + b1 -> ReLU -> @ W2 + b2 -> ReLU -> @ W3 + b3
# All matmuls accumulate in f32 on the MXU; bias add / ReLU stay in f32
# (v5e has no bf16 VPU).  Intermediates h1/h2 never touch HBM.
# ----------------------------------------------------------------------------
def mlp_kernel(x_ref, w1_ref, b1_ref, w2_ref, b2_ref, w3_ref, b3_ref, o_ref):
    # In-kernel cast of the streamed f32 input to the compute dtype (bf16 in
    # production): cheap VPU work hidden under the input DMA.
    x = x_ref[...].astype(w1_ref.dtype)

    h1 = jnp.dot(x, w1_ref[...], preferred_element_type=jnp.float32)
    h1 = jnp.maximum(h1 + b1_ref[...], 0.0)

    h2 = jnp.dot(h1.astype(w2_ref.dtype), w2_ref[...],
                 preferred_element_type=jnp.float32)
    h2 = jnp.maximum(h2 + b2_ref[...], 0.0)

    out = jnp.dot(h2.astype(w3_ref.dtype), w3_ref[...],
                  preferred_element_type=jnp.float32)
    o_ref[...] = (out + b3_ref[...]).astype(o_ref.dtype)


# ----------------------------------------------------------------------------
# Parameter preparation (call ONCE, outside the per-forward path).
# Weights are stored transposed as (in, out) so the kernel computes x @ W + b;
# weights cast to the MXU compute dtype, biases kept f32 (added post-accum).
# No padding: every weight/bias block equals its full array shape.
# ----------------------------------------------------------------------------
def prepare_params(params, compute_dtype=jnp.bfloat16):
    return {
        "w1": params["w1"].astype(compute_dtype),
        "b1": params["b1"].astype(jnp.float32),
        "w2": params["w2"].astype(compute_dtype),
        "b2": params["b2"].astype(jnp.float32),
        "w3": params["w3"].astype(compute_dtype),
        "b3": params["b3"].astype(jnp.float32),
    }


def _choose_tile_b(B, F, tile_b):
    """Balanced batch tile: multiple of 8, never overshoots B by ~a full tile,
    >= 2 tiles when B is big enough (so v7x can shard across its 2 TCs), and
    capped so double-buffered f32 x tiles stay within ~8 MiB of VMEM."""
    x_tile_budget = 8 * 1024 * 1024                      # bytes for 2x (TB, F) f32
    max_tb_vmem = max(SUBLANE, x_tile_budget // (2 * 4 * max(F, 1)))
    max_tb_vmem = max(SUBLANE, (max_tb_vmem // SUBLANE) * SUBLANE)
    tile_cap = max(SUBLANE, min(tile_b, max_tb_vmem))

    min_tiles = 2 if B > SUBLANE else 1                  # feed both v7x TCs
    n_tiles = max(pl.cdiv(B, tile_cap), min_tiles)
    return _round_up(pl.cdiv(B, n_tiles), SUBLANE)


def _vmem_limit_bytes(TB, F, C, weight_itemsize):
    x_tiles = 2 * TB * F * 4                             # double-buffered f32 input
    out_tiles = 2 * TB * C * 4                           # double-buffered f32 output
    weights = 2 * weight_itemsize * (F * H1 + H1 * H2 + H2 * C)
    biases = 2 * 4 * (H1 + H2 + C)
    live = 4 * TB * (F + H1 + H2 + C)                    # f32 intermediates headroom
    est = x_tiles + out_tiles + weights + biases + live
    # Clamp: >= 16 MiB (raise v5e's default when needed), <= 32 MiB (safe on
    # v7x's 64 MiB physical VMEM).
    return int(min(max(2 * est, 16 * 1024 * 1024), 32 * 1024 * 1024))


# ----------------------------------------------------------------------------
# Forward pass.  x: (B, F) float32 straight from the caller (no pad, no cast).
# ----------------------------------------------------------------------------
def neural_network_forward(x, prepared, *, tile_b=1024):
    B, F = x.shape
    C = prepared["w3"].shape[1]

    TB = _choose_tile_b(B, F, tile_b)
    nb = pl.cdiv(B, TB)                                  # partial edge block OK

    stream = lambda i: (i, 0)      # x / out tiles walk the batch axis
    resident = lambda i: (0, 0)    # weights & biases stay put in VMEM

    return pl.pallas_call(
        mlp_kernel,
        out_shape=jax.ShapeDtypeStruct((B, C), jnp.float32),
        grid=(nb,),
        in_specs=[
            pl.BlockSpec((TB, F), stream),       # x (f32, cast in-kernel)
            pl.BlockSpec((F, H1), resident),     # w1
            pl.BlockSpec((1, H1), resident),     # b1
            pl.BlockSpec((H1, H2), resident),    # w2
            pl.BlockSpec((1, H2), resident),     # b2
            pl.BlockSpec((H2, C), resident),     # w3
            pl.BlockSpec((1, C), resident),      # b3
        ],
        out_specs=pl.BlockSpec((TB, C), stream),
        compiler_params=pltpu.CompilerParams(
            dimension_semantics=("parallel",),   # batch tiles shard across TCs on v7x
            vmem_limit_bytes=_vmem_limit_bytes(
                TB, F, C, jnp.dtype(prepared["w1"].dtype).itemsize),
        ),
    )(x, prepared["w1"], prepared["b1"], prepared["w2"], prepared["b2"],
      prepared["w3"], prepared["b3"])


# ----------------------------------------------------------------------------
# Deterministic init matching the PyTorch module's parameter shapes.
# (PyTorch Linear stores weight as (out, in); we keep the (in, out) transpose
# so the kernel computes x @ W + b directly.)
# ----------------------------------------------------------------------------
def init_params(key, num_features, num_classes):
    ks = jax.random.split(key, 6)

    def linear(kw, kb, fan_in, fan_out):
        bound = 1.0 / jnp.sqrt(fan_in)
        w = jax.random.uniform(kw, (fan_in, fan_out), jnp.float32, -bound, bound)
        b = jax.random.uniform(kb, (1, fan_out), jnp.float32, -bound, bound)
        return w, b

    w1, b1 = linear(ks[0], ks[1], num_features, H1)
    w2, b2 = linear(ks[2], ks[3], H1, H2)
    w3, b3 = linear(ks[4], ks[5], H2, num_classes)
    return {"w1": w1, "b1": b1, "w2": w2, "b2": b2, "w3": w3, "b3": b3}


if __name__ == "__main__":
    num_features = 32
    num_classes = 10
    batch = 8

    key = jax.random.PRNGKey(0)
    k_params, k_x = jax.random.split(key)
    params = init_params(k_params, num_features, num_classes)
    x = jax.random.normal(k_x, (batch, num_features), jnp.float32)

    # Plain-JAX f32 reference (same math as the PyTorch module).
    h = jnp.maximum(x @ params["w1"] + params["b1"], 0.0)
    h = jnp.maximum(h @ params["w2"] + params["b2"], 0.0)
    ref = h @ params["w3"] + params["b3"]

    # 1) Full-precision path: tiling / edge handling must be numerically exact.
    prepared_f32 = prepare_params(params, compute_dtype=jnp.float32)
    out_f32 = neural_network_forward(x, prepared_f32)
    jax.block_until_ready(out_f32)
    assert out_f32.shape == (batch, num_classes)
    assert jnp.allclose(out_f32, ref, atol=1e-5, rtol=1e-5)

    # 2) Production bf16 path (weights in bf16, x cast in-kernel): looser tol.
    prepared_bf16 = prepare_params(params, compute_dtype=jnp.bfloat16)
    out_bf16 = neural_network_forward(x, prepared_bf16)
    jax.block_until_ready(out_bf16)
    assert out_bf16.shape == (batch, num_classes)
    assert jnp.allclose(out_bf16, ref, atol=0.1, rtol=0.1)

    print("KERNEL_OK")
</pallas_src>

<mosaic_0001>
module attributes {stable_mosaic.version = 11 : i64} {
  func.func @mlp_kernel(%arg0: i32, %arg1: memref<8x32xf32, #tpu.memory_space<vmem>>, %arg2: memref<32x64xf32, #tpu.memory_space<vmem>>, %arg3: memref<1x64xf32, #tpu.memory_space<vmem>>, %arg4: memref<64x32xf32, #tpu.memory_space<vmem>>, %arg5: memref<1x32xf32, #tpu.memory_space<vmem>>, %arg6: memref<32x10xf32, #tpu.memory_space<vmem>>, %arg7: memref<1x10xf32, #tpu.memory_space<vmem>>, %arg8: memref<8x10xf32, #tpu.memory_space<vmem>>) attributes {dimension_semantics = [#tpu.dimension_semantics<parallel>], iteration_bounds = array<i64: 1>, scalar_prefetch = 0 : i64, scratch_operands = 0 : i64, tpu.core_type = #tpu.core_type<tc>, window_params = [{transform_indices = @transform_0, window_bounds = array<i64: 8, 32>}, {pipeline_mode = #tpu.pipeline_mode<synchronous>, transform_indices = @transform_1, window_bounds = array<i64: 32, 64>}, {pipeline_mode = #tpu.pipeline_mode<synchronous>, transform_indices = @transform_2, window_bounds = array<i64: 1, 64>}, {pipeline_mode = #tpu.pipeline_mode<synchronous>, transform_indices = @transform_3, window_bounds = array<i64: 64, 32>}, {pipeline_mode = #tpu.pipeline_mode<synchronous>, transform_indices = @transform_4, window_bounds = array<i64: 1, 32>}, {pipeline_mode = #tpu.pipeline_mode<synchronous>, transform_indices = @transform_5, window_bounds = array<i64: 32, 10>}, {pipeline_mode = #tpu.pipeline_mode<synchronous>, transform_indices = @transform_6, window_bounds = array<i64: 1, 10>}, {transform_indices = @transform_7, window_bounds = array<i64: 8, 10>}]} {
    %c0 = arith.constant 0 : index
    %c0_0 = arith.constant 0 : index
    %0 = vector.load %arg1[%c0, %c0_0] : memref<8x32xf32, #tpu.memory_space<vmem>>, vector<8x32xf32>
    %c0_1 = arith.constant 0 : index
    %c0_2 = arith.constant 0 : index
    %1 = vector.load %arg2[%c0_1, %c0_2] : memref<32x64xf32, #tpu.memory_space<vmem>>, vector<32x64xf32>
    %cst = arith.constant dense<0.000000e+00> : vector<8x64xf32>
    %2 = tpu.matmul %0, %1, %cst {dimension_numbers = #tpu.dot_dimension_numbers<[1], [0], [0], [1], [0, 0, 1, 1], [], []>} : vector<8x32xf32>, vector<32x64xf32>, vector<8x64xf32> -> vector<8x64xf32>
    %c0_3 = arith.constant 0 : index
    %c0_4 = arith.constant 0 : index
    %3 = vector.load %arg3[%c0_3, %c0_4] : memref<1x64xf32, #tpu.memory_space<vmem>>, vector<1x64xf32>
    %4 = vector.broadcast %3 : vector<1x64xf32> to vector<8x64xf32>
    %5 = arith.addf %2, %4 : vector<8x64xf32>
    %cst_5 = arith.constant 0.000000e+00 : f32
    %6 = vector.broadcast %cst_5 : f32 to vector<8x64xf32>
    %7 = arith.maximumf %5, %6 : vector<8x64xf32>
    %c0_6 = arith.constant 0 : index
    %c0_7 = arith.constant 0 : index
    %8 = vector.load %arg4[%c0_6, %c0_7] : memref<64x32xf32, #tpu.memory_space<vmem>>, vector<64x32xf32>
    %cst_8 = arith.constant dense<0.000000e+00> : vector<8x32xf32>
    %9 = tpu.matmul %7, %8, %cst_8 {dimension_numbers = #tpu.dot_dimension_numbers<[1], [0], [0], [1], [0, 0, 1, 1], [], []>} : vector<8x64xf32>, vector<64x32xf32>, vector<8x32xf32> -> vector<8x32xf32>
    %c0_9 = arith.constant 0 : index
    %c0_10 = arith.constant 0 : index
    %10 = vector.load %arg5[%c0_9, %c0_10] : memref<1x32xf32, #tpu.memory_space<vmem>>, vector<1x32xf32>
    %11 = vector.broadcast %10 : vector<1x32xf32> to vector<8x32xf32>
    %12 = arith.addf %9, %11 : vector<8x32xf32>
    %cst_11 = arith.constant 0.000000e+00 : f32
    %13 = vector.broadcast %cst_11 : f32 to vector<8x32xf32>
    %14 = arith.maximumf %12, %13 : vector<8x32xf32>
    %c0_12 = arith.constant 0 : index
    %c0_13 = arith.constant 0 : index
    %15 = vector.load %arg6[%c0_12, %c0_13] : memref<32x10xf32, #tpu.memory_space<vmem>>, vector<32x10xf32>
    %cst_14 = arith.constant dense<0.000000e+00> : vector<8x10xf32>
    %16 = tpu.matmul %14, %15, %cst_14 {dimension_numbers = #tpu.dot_dimension_numbers<[1], [0], [0], [1], [0, 0, 1, 1], [], []>} : vector<8x32xf32>, vector<32x10xf32>, vector<8x10xf32> -> vector<8x10xf32>
    %c0_15 = arith.constant 0 : index
    %c0_16 = arith.constant 0 : index
    %17 = vector.load %arg7[%c0_15, %c0_16] : memref<1x10xf32, #tpu.memory_space<vmem>>, vector<1x10xf32>
    %18 = vector.broadcast %17 : vector<1x10xf32> to vector<8x10xf32>
    %19 = arith.addf %16, %18 : vector<8x10xf32>
    %c0_17 = arith.constant 0 : index
    %c0_18 = arith.constant 0 : index
    %20 = vector.load %arg8[%c0_17, %c0_18] : memref<8x10xf32, #tpu.memory_space<vmem>>, vector<8x10xf32>
    tpu.vector_store %arg8[%c0_17, %c0_18], %19 {strides = array<i32>} : memref<8x10xf32, #tpu.memory_space<vmem>>, vector<8x10xf32>,
    return
  }
  func.func @transform_0(%arg0: i32) -> (i32, i32) {
    %c0_i32 = arith.constant 0 : i32
    %c0_i32_0 = arith.constant 0 : i32
    return %arg0, %c0_i32 : i32, i32
  }
  func.func @transform_1(%arg0: i32) -> (i32, i32) {
    %c0_i32 = arith.constant 0 : i32
    %c0_i32_0 = arith.constant 0 : i32
    %c0_i32_1 = arith.constant 0 : i32
    return %c0_i32, %c0_i32_0 : i32, i32
  }
  func.func @transform_2(%arg0: i32) -> (i32, i32) {
    %c0_i32 = arith.constant 0 : i32
    %c0_i32_0 = arith.constant 0 : i32
    %c0_i32_1 = arith.constant 0 : i32
    return %c0_i32, %c0_i32_0 : i32, i32
  }
  func.func @transform_3(%arg0: i32) -> (i32, i32) {
    %c0_i32 = arith.constant 0 : i32
    %c0_i32_0 = arith.constant 0 : i32
    %c0_i32_1 = arith.constant 0 : i32
    return %c0_i32, %c0_i32_0 : i32, i32
  }
  func.func @transform_4(%arg0: i32) -> (i32, i32) {
    %c0_i32 = arith.constant 0 : i32
    %c0_i32_0 = arith.constant 0 : i32
    %c0_i32_1 = arith.constant 0 : i32
    return %c0_i32, %c0_i32_0 : i32, i32
  }
  func.func @transform_5(%arg0: i32) -> (i32, i32) {
    %c0_i32 = arith.constant 0 : i32
    %c0_i32_0 = arith.constant 0 : i32
    %c0_i32_1 = arith.constant 0 : i32
    return %c0_i32, %c0_i32_0 : i32, i32
  }
  func.func @transform_6(%arg0: i32) -> (i32, i32) {
    %c0_i32 = arith.constant 0 : i32
    %c0_i32_0 = arith.constant 0 : i32
    %c0_i32_1 = arith.constant 0 : i32
    return %c0_i32, %c0_i32_0 : i32, i32
  }
  func.func @transform_7(%arg0: i32) -> (i32, i32) {
    %c0_i32 = arith.constant 0 : i32
    %c0_i32_0 = arith.constant 0 : i32
    return %arg0, %c0_i32 : i32, i32
  }
}

</mosaic_0001>

<bundles_post_ra>
// kernel: tpu_custom_call.1
= control target key start
LH: loop header
LB: loop body
LE: loop exit
PB: predicated region body
PF: predicated region fallthrough
CT: control target
= control target key end

     0   :  { %s286_s0 = inlined_call_operand.vmem [shape: f32[8,32], index: 0, kind: input, shape index: {}]   ;;  %s287_s1 = inlined_call_operand.vmem [shape: f32[32,64], index: 1, kind: input, shape index: {}]   ;;  %s288_s2 = inlined_call_operand.vmem [shape: f32[1,64], index: 2, kind: input, shape index: {}]   ;;  %s289_s3 = inlined_call_operand.vmem [shape: f32[64,32], index: 3, kind: input, shape index: {}]   ;;  %s290_s4 = inlined_call_operand.vmem [shape: f32[1,32], index: 4, kind: input, shape index: {}]   ;;  %s291_s5 = inlined_call_operand.vmem [shape: f32[32,10], index: 5, kind: input, shape index: {}]   ;;  %s292_s6 = inlined_call_operand.vmem [shape: f32[1,10], index: 6, kind: input, shape index: {}]   ;;  %s293_s7 = inlined_call_operand.hbm [shape: f32[8,10], index: 7, kind: output, shape index: {}]  }
   0x1   :  { %v31_v0 = vld [vmem:[%s287_s1 + $0x18] sm:$0xff]  ;;  %v30_v1 = vld [vmem:[%s287_s1 + $0x10] sm:$0xff]  ;;  %v29_v3 = vld [vmem:[%s287_s1 + $0x8] sm:$0xff] }
   0x2   :  { %52 = vmatpush.msra.mxu0 %v31_v0  ;;  %v68_v2 = vld [vmem:[%s289_s3 + $0x38] sm:$0xff]  ;;  %v67_v4 = vld [vmem:[%s289_s3 + $0x30] sm:$0xff]  ;;  %v28_v5 = vld [vmem:[%s287_s1] sm:$0xff] }
   0x3   :  { %85 = vmatpush.msra.mxu1 %v68_v2  ;;  %v66_v6 = vld [vmem:[%s289_s3 + $0x28] sm:$0xff] }
   0x4   :  { %53 = vmatpush.msra.mxu0 %v30_v1 }
   0x5   :  { %86 = vmatpush.msra.mxu1 %v67_v4 }
   0x6   :  { %12 = vsyncpa [#allocation3], 0  ;;  %54 = vmatpush.msra.mxu0 %v29_v3  ;;  %v27_v7 = vld [vmem:[%s286_s0] sm:$0xff]  ;;  %vm36_vm0 = vcmask 261120   ;;  %v64_v9 = vld [vmem:[%s289_s3 + $0x18] sm:$0xff]  ;;  %vm73_vm1 = vcmask 523264  }
   0x7   :  { %v65_v8 = vld [vmem:[%s289_s3 + $0x20] sm:$0xff]  ;;  %87 = vmatpush.msra.mxu1 %v66_v6  ;;  %v63_v10 = vld [vmem:[%s289_s3 + $0x10] sm:$0xff]  ;;  %v62_v11 = vld [vmem:[%s289_s3 + $0x8] sm:$0xff]  ;;  %s180_s14 = smov [#allocation2]   ;;  %vm129_vm2 = vcmask 80896  }
   0x8   :  { %55 = vmatpush.msra.mxu0 %v28_v5  ;;  %v61_v12 = vld [vmem:[%s289_s3] sm:$0xff]  ;;  %v101_v13 = vld [vmem:[%s291_s5 + $0x18] sm:$0xff]  ;;  %v100_v18 = vld [vmem:[%s291_s5 + $0x10] sm:$0xff]  ;;  %s136_s15 = sshll.u32 %s180_s14, 4  ;;  %s137_s15 = int_to_ptr.vmem [resolvable:$true] %s136_s15 }
   0x9   :  { %147 = vmatmul.msk.f32.vlgmr.msra.gmra.mxu0 %vm36_vm0, %v27_v7  ;;  %88 = vmatpush.msra.mxu1 %v65_v8  ;;  %v151_v14 = vld [vmem:[%s288_s2] ss:$0 sm:$0xff]  ;;  %v99_v19 = vld [vmem:[%s291_s5 + $0x8] sm:$0xff] }
   0xa   :  { %121 = vmatpush.msra.mxu2 %v101_v13  ;;  %v98_v20 = vld [vmem:[%s291_s5] sm:$0xff]  ;;  %s138_s5 = sshll.u32 %s293_s7, 4  ;;  %s139_s5 = int_to_ptr.hbm [resolvable:$true] %s138_s5 }
   0xb   :  { %89 = vmatpush.msra.mxu1 %v64_v9  ;;  %v152_v21 = vld [vmem:[%s290_s4] ss:$0 sm:$0xff] }
   0xc   :  { %122 = vmatpush.msra.mxu2 %v100_v18  ;;  %v153_v25 = vld [vmem:[%s292_s6] ss:$0 sm:$0xff] }
   0xd   :  { %90 = vmatpush.msra.mxu1 %v63_v10 }
   0xe   :  { %123 = vmatpush.msra.mxu2 %v99_v19 }
   0xf   :  { %91 = vmatpush.msra.mxu1 %v62_v11 }
  0x10   :  { %124 = vmatpush.msra.mxu2 %v98_v20 }
  0x11   :  { %92 = vmatpush.msra.mxu1 %v61_v12 }
  0x86   :  { %v57_v15 = vpop.f32.mrf.mxu0 }
  0x87   :  { %v58_v16 = vadd.f32 %v151_v14, %v57_v15 }
  0x89   :  { %v60_v17 = vmax.f32 %v58_v16, 0.0 }
  0x8b   :  { %148 = vmatmul.msk.f32.vlgmr.msra.gmra.mxu1 %vm73_vm1, %v60_v17 }
 0x108   :  { %v94_v22 = vpop.f32.mrf.mxu1 }
 0x109   :  { %v95_v23 = vadd.f32 %v152_v21, %v94_v22 }
 0x10b   :  { %v97_v24 = vmax.f32 %v95_v23, 0.0 }
 0x10d   :  { %149 = vmatmul.msk.f32.vlgmr.msra.gmra.mxu2 %vm36_vm0, %v97_v24 }
 0x190   :  { %v126_v26 = vpop.f32.mrf.mxu2 }
 0x191   :  { %v127_v27 = vadd.f32 %v153_v25, %v126_v26 }
 0x193   :  { %130 = vst.msk [vmem:[#allocation2] sm:$0xff] %vm129_vm2, %v127_v27 }
 0x194   :  { %141 = dma.vmem_to_hbm [thread:$0]  %s137_s15, 128, %s139_s5, [#allocation3]  }
 0x195   :  { %178 = dma.done.wait [#allocation3], 128  }
 0x196   :  { %179 = vsyncadd [#allocation3], 4294967168 }
 0x197   :  { %146 = vsyncpa [#allocation3], 1 }

</bundles_post_ra>
